<compile_context>
chip_gen: v6e
topology: v6e:2x2x1
jax: 0.10.0
libtpu: 0.0.40
codegen_flags: <defaults>
</compile_context>

<pallas_src>
import jax
import jax.numpy as jnp
from jax.experimental import pallas as pl
from jax.experimental.pallas import tpu as pltpu

LANE = 128
SUBLANE = 8


def _round_up(x, m):
    return ((x + m - 1) // m) * m


def mlp_kernel(x_ref, w1_ref, b1_ref, w2_ref, b2_ref, w3_ref, b3_ref, o_ref):
    # fc1 + ReLU  (bf16 matmul -> f32 accumulation -> f32 bias/ReLU)
    x = x_ref[...].astype(jnp.bfloat16)
    h1 = jnp.dot(x, w1_ref[...], preferred_element_type=jnp.float32)
    h1 = jnp.maximum(h1 + b1_ref[...], 0.0)
    # fc2 + ReLU
    h2 = jnp.dot(h1.astype(jnp.bfloat16), w2_ref[...],
                 preferred_element_type=jnp.float32)
    h2 = jnp.maximum(h2 + b2_ref[...], 0.0)
    # fc3 (no activation); output is lane-padded to a multiple of 128
    out = jnp.dot(h2.astype(jnp.bfloat16), w3_ref[...],
                  preferred_element_type=jnp.float32) + b3_ref[...]
    o_ref[...] = out.astype(o_ref.dtype)


def neural_network_forward(state, w1, b1, w2, b2, w3, b3, *, tm=256):
    """Forward pass of the 3-layer MLP as one batch-gridded Pallas kernel.

    state: (B, num_states) f32
    w_i:   (in_i, out_i)   f32  (transposed relative to torch Linear storage)
    b_i:   (1, out_i)      f32
    returns (B, num_actions) f32
    """
    B, num_states = state.shape
    fc1_size = w1.shape[1]
    fc2_size = w2.shape[1]
    num_actions = w3.shape[1]

    # Lane-dense output: pad final feature dim to a multiple of 128.
    n_pad = _round_up(num_actions, LANE)
    w3p = jnp.pad(w3, ((0, 0), (0, n_pad - num_actions)))
    b3p = jnp.pad(b3, ((0, 0), (0, n_pad - num_actions)))

    # Weights go through the MXU in bf16 (halves their DMA/VMEM footprint too).
    w1b = w1.astype(jnp.bfloat16)
    w2b = w2.astype(jnp.bfloat16)
    w3b = w3p.astype(jnp.bfloat16)

    # Batch tile: a multiple of 8 sublanes, capped at the (padded) batch.
    tm = max(SUBLANE, (min(tm, _round_up(B, SUBLANE)) // SUBLANE) * SUBLANE)
    b_pad = _round_up(B, tm)
    x = state if b_pad == B else jnp.pad(state, ((0, b_pad - B), (0, 0)))
    grid = (b_pad // tm,)

    flops = 2 * b_pad * (num_states * fc1_size
                         + fc1_size * fc2_size
                         + fc2_size * n_pad)
    bytes_accessed = (x.size * 4 + w1b.size * 2 + w2b.size * 2 + w3b.size * 2
                      + b1.size * 4 + b2.size * 4 + b3p.size * 4
                      + b_pad * n_pad * 4)

    out = pl.pallas_call(
        mlp_kernel,
        out_shape=jax.ShapeDtypeStruct((b_pad, n_pad), jnp.float32),
        grid=grid,
        in_specs=[
            # Activation tile: streamed + double-buffered across the batch grid.
            pl.BlockSpec((tm, num_states), lambda i: (i, 0)),
            # Weights / biases: same block every step -> resident in VMEM.
            pl.BlockSpec(w1b.shape, lambda i: (0, 0)),
            pl.BlockSpec(b1.shape, lambda i: (0, 0)),
            pl.BlockSpec(w2b.shape, lambda i: (0, 0)),
            pl.BlockSpec(b2.shape, lambda i: (0, 0)),
            pl.BlockSpec(w3b.shape, lambda i: (0, 0)),
            pl.BlockSpec(b3p.shape, lambda i: (0, 0)),
        ],
        out_specs=pl.BlockSpec((tm, n_pad), lambda i: (i, 0)),
        compiler_params=pltpu.CompilerParams(
            dimension_semantics=("parallel",)),  # megacore sharding on v7x
        cost_estimate=pl.CostEstimate(
            flops=flops, transcendentals=0, bytes_accessed=bytes_accessed),
    )(x, w1b, b1, w2b, b2, w3b, b3p)

    return out[:B, :num_actions]


def reference_forward(state, w1, b1, w2, b2, w3, b3):
    # Same math as the kernel (bf16 matmul inputs, f32 accumulation/bias/ReLU).
    bf16 = jnp.bfloat16
    h1 = jnp.maximum(
        jnp.dot(state.astype(bf16), w1.astype(bf16),
                preferred_element_type=jnp.float32) + b1, 0.0)
    h2 = jnp.maximum(
        jnp.dot(h1.astype(bf16), w2.astype(bf16),
                preferred_element_type=jnp.float32) + b2, 0.0)
    return jnp.dot(h2.astype(bf16), w3.astype(bf16),
                   preferred_element_type=jnp.float32) + b3


def init_linear_params(key, fan_in, fan_out):
    # PyTorch nn.Linear default init: U(-1/sqrt(fan_in), 1/sqrt(fan_in))
    kw, kb = jax.random.split(key)
    bound = 1.0 / jnp.sqrt(jnp.float32(fan_in))
    # store weight as (in, out) so the kernel does x @ W
    w = jax.random.uniform(kw, (fan_in, fan_out), jnp.float32, -bound, bound)
    b = jax.random.uniform(kb, (1, fan_out), jnp.float32, -bound, bound)
    return w, b


if __name__ == "__main__":
    # Shapes consistent with the module: num_states=8, num_actions=4, hidden=64.
    batch = 8
    num_states = 8
    num_actions = 4
    fc1_size = 64
    fc2_size = 64

    key = jax.random.PRNGKey(0)
    k_in, k1, k2, k3 = jax.random.split(key, 4)

    state = jax.random.normal(k_in, (batch, num_states), jnp.float32)
    w1, b1 = init_linear_params(k1, num_states, fc1_size)
    w2, b2 = init_linear_params(k2, fc1_size, fc2_size)
    w3, b3 = init_linear_params(k3, fc2_size, num_actions)

    out = neural_network_forward(state, w1, b1, w2, b2, w3, b3)
    out = jax.block_until_ready(out)
    ref = reference_forward(state, w1, b1, w2, b2, w3, b3)
    assert out.shape == (batch, num_actions)
    assert jnp.allclose(out, ref, atol=1e-4, rtol=1e-4)

    # Exercise the multi-step grid + batch-padding path (grid=3, tail padded).
    state2 = jax.random.normal(k_in, (40, num_states), jnp.float32)
    out2 = jax.block_until_ready(
        neural_network_forward(state2, w1, b1, w2, b2, w3, b3, tm=16))
    ref2 = reference_forward(state2, w1, b1, w2, b2, w3, b3)
    assert out2.shape == (40, num_actions)
    assert jnp.allclose(out2, ref2, atol=1e-4, rtol=1e-4)

    print("KERNEL_OK")
</pallas_src>

<mosaic_0001>
module attributes {stable_mosaic.version = 11 : i64} {
  func.func @mlp_kernel(%arg0: i32, %arg1: memref<8x8xf32, #tpu.memory_space<vmem>>, %arg2: memref<8x64xbf16, #tpu.memory_space<vmem>>, %arg3: memref<1x64xf32, #tpu.memory_space<vmem>>, %arg4: memref<64x64xbf16, #tpu.memory_space<vmem>>, %arg5: memref<1x64xf32, #tpu.memory_space<vmem>>, %arg6: memref<64x128xbf16, #tpu.memory_space<vmem>>, %arg7: memref<1x128xf32, #tpu.memory_space<vmem>>, %arg8: memref<8x128xf32, #tpu.memory_space<vmem>>) attributes {dimension_semantics = [#tpu.dimension_semantics<parallel>], iteration_bounds = array<i64: 1>, scalar_prefetch = 0 : i64, scratch_operands = 0 : i64, tpu.core_type = #tpu.core_type<tc>, window_params = [{transform_indices = @transform_0, window_bounds = array<i64: 8, 8>}, {pipeline_mode = #tpu.pipeline_mode<synchronous>, transform_indices = @transform_1, window_bounds = array<i64: 8, 64>}, {pipeline_mode = #tpu.pipeline_mode<synchronous>, transform_indices = @transform_2, window_bounds = array<i64: 1, 64>}, {pipeline_mode = #tpu.pipeline_mode<synchronous>, transform_indices = @transform_3, window_bounds = array<i64: 64, 64>}, {pipeline_mode = #tpu.pipeline_mode<synchronous>, transform_indices = @transform_4, window_bounds = array<i64: 1, 64>}, {pipeline_mode = #tpu.pipeline_mode<synchronous>, transform_indices = @transform_5, window_bounds = array<i64: 64, 128>}, {pipeline_mode = #tpu.pipeline_mode<synchronous>, transform_indices = @transform_6, window_bounds = array<i64: 1, 128>}, {transform_indices = @transform_7, window_bounds = array<i64: 8, 128>}]} {
    %c0 = arith.constant 0 : index
    %c0_0 = arith.constant 0 : index
    %0 = vector.load %arg1[%c0, %c0_0] : memref<8x8xf32, #tpu.memory_space<vmem>>, vector<8x8xf32>
    %1 = arith.truncf %0 : vector<8x8xf32> to vector<8x8xbf16>
    %c0_1 = arith.constant 0 : index
    %c0_2 = arith.constant 0 : index
    %2 = vector.load %arg2[%c0_1, %c0_2] : memref<8x64xbf16, #tpu.memory_space<vmem>>, vector<8x64xbf16>
    %cst = arith.constant dense<0.000000e+00> : vector<8x64xf32>
    %3 = tpu.matmul %1, %2, %cst {dimension_numbers = #tpu.dot_dimension_numbers<[1], [0], [0], [1], [0, 0, 1, 1], [], []>} : vector<8x8xbf16>, vector<8x64xbf16>, vector<8x64xf32> -> vector<8x64xf32>
    %c0_3 = arith.constant 0 : index
    %c0_4 = arith.constant 0 : index
    %4 = vector.load %arg3[%c0_3, %c0_4] : memref<1x64xf32, #tpu.memory_space<vmem>>, vector<1x64xf32>
    %5 = vector.broadcast %4 : vector<1x64xf32> to vector<8x64xf32>
    %6 = arith.addf %3, %5 : vector<8x64xf32>
    %cst_5 = arith.constant 0.000000e+00 : f32
    %7 = vector.broadcast %cst_5 : f32 to vector<8x64xf32>
    %8 = arith.maximumf %6, %7 : vector<8x64xf32>
    %9 = arith.truncf %8 : vector<8x64xf32> to vector<8x64xbf16>
    %c0_6 = arith.constant 0 : index
    %c0_7 = arith.constant 0 : index
    %10 = vector.load %arg4[%c0_6, %c0_7] : memref<64x64xbf16, #tpu.memory_space<vmem>>, vector<64x64xbf16>
    %cst_8 = arith.constant dense<0.000000e+00> : vector<8x64xf32>
    %11 = tpu.matmul %9, %10, %cst_8 {dimension_numbers = #tpu.dot_dimension_numbers<[1], [0], [0], [1], [0, 0, 1, 1], [], []>} : vector<8x64xbf16>, vector<64x64xbf16>, vector<8x64xf32> -> vector<8x64xf32>
    %c0_9 = arith.constant 0 : index
    %c0_10 = arith.constant 0 : index
    %12 = vector.load %arg5[%c0_9, %c0_10] : memref<1x64xf32, #tpu.memory_space<vmem>>, vector<1x64xf32>
    %13 = vector.broadcast %12 : vector<1x64xf32> to vector<8x64xf32>
    %14 = arith.addf %11, %13 : vector<8x64xf32>
    %cst_11 = arith.constant 0.000000e+00 : f32
    %15 = vector.broadcast %cst_11 : f32 to vector<8x64xf32>
    %16 = arith.maximumf %14, %15 : vector<8x64xf32>
    %17 = arith.truncf %16 : vector<8x64xf32> to vector<8x64xbf16>
    %c0_12 = arith.constant 0 : index
    %c0_13 = arith.constant 0 : index
    %18 = vector.load %arg6[%c0_12, %c0_13] : memref<64x128xbf16, #tpu.memory_space<vmem>>, vector<64x128xbf16>
    %cst_14 = arith.constant dense<0.000000e+00> : vector<8x128xf32>
    %19 = tpu.matmul %17, %18, %cst_14 {dimension_numbers = #tpu.dot_dimension_numbers<[1], [0], [0], [1], [0, 0, 1, 1], [], []>} : vector<8x64xbf16>, vector<64x128xbf16>, vector<8x128xf32> -> vector<8x128xf32>
    %c0_15 = arith.constant 0 : index
    %c0_16 = arith.constant 0 : index
    %20 = vector.load %arg7[%c0_15, %c0_16] : memref<1x128xf32, #tpu.memory_space<vmem>>, vector<1x128xf32>
    %21 = vector.broadcast %20 : vector<1x128xf32> to vector<8x128xf32>
    %22 = arith.addf %19, %21 : vector<8x128xf32>
    %c0_17 = arith.constant 0 : index
    %c0_18 = arith.constant 0 : index
    %23 = vector.load %arg8[%c0_17, %c0_18] : memref<8x128xf32, #tpu.memory_space<vmem>>, vector<8x128xf32>
    tpu.vector_store %arg8[%c0_17, %c0_18], %22 {strides = array<i32>} : memref<8x128xf32, #tpu.memory_space<vmem>>, vector<8x128xf32>,
    return
  }
  func.func @transform_0(%arg0: i32) -> (i32, i32) {
    %c0_i32 = arith.constant 0 : i32
    %c0_i32_0 = arith.constant 0 : i32
    return %arg0, %c0_i32 : i32, i32
  }
  func.func @transform_1(%arg0: i32) -> (i32, i32) {
    %c0_i32 = arith.constant 0 : i32
    %c0_i32_0 = arith.constant 0 : i32
    %c0_i32_1 = arith.constant 0 : i32
    return %c0_i32, %c0_i32_0 : i32, i32
  }
  func.func @transform_2(%arg0: i32) -> (i32, i32) {
    %c0_i32 = arith.constant 0 : i32
    %c0_i32_0 = arith.constant 0 : i32
    %c0_i32_1 = arith.constant 0 : i32
    return %c0_i32, %c0_i32_0 : i32, i32
  }
  func.func @transform_3(%arg0: i32) -> (i32, i32) {
    %c0_i32 = arith.constant 0 : i32
    %c0_i32_0 = arith.constant 0 : i32
    %c0_i32_1 = arith.constant 0 : i32
    return %c0_i32, %c0_i32_0 : i32, i32
  }
  func.func @transform_4(%arg0: i32) -> (i32, i32) {
    %c0_i32 = arith.constant 0 : i32
    %c0_i32_0 = arith.constant 0 : i32
    %c0_i32_1 = arith.constant 0 : i32
    return %c0_i32, %c0_i32_0 : i32, i32
  }
  func.func @transform_5(%arg0: i32) -> (i32, i32) {
    %c0_i32 = arith.constant 0 : i32
    %c0_i32_0 = arith.constant 0 : i32
    %c0_i32_1 = arith.constant 0 : i32
    return %c0_i32, %c0_i32_0 : i32, i32
  }
  func.func @transform_6(%arg0: i32) -> (i32, i32) {
    %c0_i32 = arith.constant 0 : i32
    %c0_i32_0 = arith.constant 0 : i32
    %c0_i32_1 = arith.constant 0 : i32
    return %c0_i32, %c0_i32_0 : i32, i32
  }
  func.func @transform_7(%arg0: i32) -> (i32, i32) {
    %c0_i32 = arith.constant 0 : i32
    %c0_i32_0 = arith.constant 0 : i32
    return %arg0, %c0_i32 : i32, i32
  }
}

</mosaic_0001>

<bundles_post_ra>
// kernel: tpu_custom_call.1
= control target key start
LH: loop header
LB: loop body
LE: loop exit
PB: predicated region body
PF: predicated region fallthrough
CT: control target
= control target key end

     0   :  { %12 = vsyncpa [#allocation3], 0  ;;  %s583_s0 = inlined_call_operand.hbm [shape: f32[8,8], index: 0, kind: input, shape index: {}]   ;;  %s584_s1 = inlined_call_operand.hbm [shape: bf16[8,64], index: 1, kind: input, shape index: {}]   ;;  %s585_s2 = inlined_call_operand.vmem [shape: f32[1,64], index: 2, kind: input, shape index: {}]   ;;  %s586_s3 = inlined_call_operand.hbm [shape: bf16[64,64], index: 3, kind: input, shape index: {}]   ;;  %s587_s4 = inlined_call_operand.vmem [shape: f32[1,64], index: 4, kind: input, shape index: {}]   ;;  %s588_s5 = inlined_call_operand.hbm [shape: bf16[64,128], index: 5, kind: input, shape index: {}]   ;;  %s589_s6 = inlined_call_operand.vmem [shape: f32[1,128], index: 6, kind: input, shape index: {}]   ;;  %s590_s7 = inlined_call_operand.hbm [shape: f32[8,128], index: 7, kind: output, shape index: {}]  }
   0x1   :  { %13 = vsyncpa [#allocation6], 0 }
   0x2   :  { %14 = vsyncpa [#allocation9], 0 }
   0x3   :  { %15 = vsyncpa [#allocation4], 0  ;;  %s505_s24 = smov [#allocation5]   ;;  %s506_s26 = smov [#allocation2]  }
   0x4   :  { %s32_s25 = sshll.u32 %s505_s24, 4  ;;  %s22_s27 = sshll.u32 %s506_s26, 4  ;;  %s33_s25 = int_to_ptr.vmem [resolvable:$true] %s32_s25  ;;  %s23_s27 = int_to_ptr.vmem [resolvable:$true] %s22_s27 }
   0x5   :  { %s405_s28 = scalar_lea.vmem %s33_s25, 64  ;;  %p410_p1 = scmp.lt.s32.totalorder %s33_s25, %s33_s25 }
   0x6   :  { %p406_p0 = scmp.ne.s32.totalorder %s33_s25, %s405_s28  ;;  %p411_p2 = scmp.lt.s32.totalorder %s405_s28, %s405_s28 }
   0x8   :  { %p412_p3 = por %p411_p2, %p410_p1 }
   0xa   :  { %p413_p4 = pnand %p412_p3, %p406_p0 }
   0xc   :  { %416 = shalt.err (!%p413_p4)
}
   0xd   :  { %35 = dma.hbm_to_vmem [thread:$0]  %s584_s1, 64, %s33_s25, [#allocation6]  }
   0xe   :  { %s425_s8 = scalar_lea.vmem %s23_s27, 128  ;;  %p430_p6 = scmp.lt.s32.totalorder %s23_s27, %s23_s27 }
   0xf   :  { %p426_p5 = scmp.ne.s32.totalorder %s23_s27, %s425_s8  ;;  %p431_p7 = scmp.lt.s32.totalorder %s425_s8, %s425_s8 }
  0x11   :  { %p432_p8 = por %p431_p7, %p430_p6 }
  0x13   :  { %p433_p9 = pnand %p432_p8, %p426_p5 }
  0x15   :  { %436 = shalt.err (!%p433_p9)
}
  0x16   :  { %25 = dma.hbm_to_vmem [thread:$0]  %s583_s0, 128, %s23_s27, [#allocation3]  }
  0x17   :  { %s507_s11 = smov [#allocation7]  }
  0x18   :  { %s43_s12 = sshll.u32 %s507_s11, 4  ;;  %s44_s12 = int_to_ptr.vmem [resolvable:$true] %s43_s12 }
  0x19   :  { %s445_s13 = scalar_lea.vmem %s44_s12, 512  ;;  %p450_p11 = scmp.lt.s32.totalorder %s44_s12, %s44_s12 }
  0x1a   :  { %p446_p10 = scmp.ne.s32.totalorder %s44_s12, %s445_s13  ;;  %p451_p12 = scmp.lt.s32.totalorder %s445_s13, %s445_s13 }
  0x1c   :  { %p452_p13 = por %p451_p12, %p450_p11 }
  0x1e   :  { %p453_p0 = pnand %p452_p13, %p446_p10 }
  0x20   :  { %456 = shalt.err (!%p453_p0)
}
  0x21   :  { %s508_s1 = smov 64   ;;  %s509_s14 = smov 4  }
  0x22   :  { %49 = dma.hbm_to_vmem [thread:$0]  %s586_s3, 512, %s44_s12, [#allocation6], %s508_s1, %s508_s1, %s509_s14  }
  0x23   :  { %s510_s17 = smov [#allocation8]  }
  0x24   :  { %s57_s18 = sshll.u32 %s510_s17, 4  ;;  %s58_s18 = int_to_ptr.vmem [resolvable:$true] %s57_s18 }
  0x25   :  { %s465_s0 = scalar_lea.vmem %s58_s18, 512  ;;  %p470_p2 = scmp.lt.s32.totalorder %s58_s18, %s58_s18 }
  0x26   :  { %p466_p1 = scmp.ne.s32.totalorder %s58_s18, %s465_s0  ;;  %p471_p3 = scmp.lt.s32.totalorder %s465_s0, %s465_s0 }
  0x28   :  { %p472_p4 = por %p471_p3, %p470_p2 }
  0x2a   :  { %p473_p5 = pnand %p472_p4, %p466_p1 }
  0x2c   :  { %476 = shalt.err (!%p473_p5)
}
  0x2d   :  { %63 = dma.hbm_to_vmem [thread:$0]  %s588_s5, 512, %s58_s18, [#allocation9], %s508_s1, %s508_s1, %s509_s14  }
  0x2e   :  { %497 = dma.done.wait [#allocation3], 128  }
  0x2f   :  { %498 = vsyncadd [#allocation3], 4294967168 }
  0x30   :  { %499 = dma.done.wait [#allocation6], 576  }
  0x31   :  { %500 = vsyncadd [#allocation6], 4294966720 }
  0x32   :  { %501 = dma.done.wait [#allocation9], 512  }
  0x33   :  { %502 = vsyncadd [#allocation9], 4294966784  ;;  %v511_v0 = vmov 0.0   ;;  %vm512_vm0 = vmmov 0   ;;  %vm93_vm1 = vcmask 1043456   ;;  %v79_v2 = vld [vmem:[#allocation2] sm:$0xff] }
  0x34   :  { %350 = vmatprep.subr.bf16.mxu0 %v511_v0  ;;  %352 = vmatprep.mubr.msk.bf16.mxu0 %vm512_vm0, %v511_v0  ;;  %v81_v1 = vld [vmem:[#allocation5] sm:$0xf]  ;;  %v80_v4 = vpack.c.bf16 %v79_v2, %v79_v2  ;;  %vm89_vm2 = vcmask 64512   ;;  %v390_v6 = vld [vmem:[#allocation7 + $0x10] sm:$0xff]   ;;  %v391_v7 = vld [vmem:[#allocation7 + $0x8] sm:$0xff]   ;;  %vm178_vm3 = vcmask 523264  }
  0x35   :  { %356 = vmatprep.subr.bf16.mxu1 %v511_v0  ;;  %364 = vmatprep.mubr.msk.bf16.mxu1 %vm512_vm0, %v511_v0  ;;  %v95_v3 = vsel %vm93_vm1, %v81_v1, 0  ;;  %v389_v5 = vld [vmem:[#allocation7 + $0x18] sm:$0xff]   ;;  %v392_v8 = vld [vmem:[#allocation7] sm:$0xff]   ;;  %v394_v10 = vld [vmem:[#allocation8 + $0x10] sm:$0xff]   ;;  %s513_s24 = smov [#allocation10]  }
  0x36   :  { %351 = vmatpush3.bf16.msra.mxu0 %v95_v3  ;;  %357 = vmatpush3.bf16.msra.mxu1 %v389_v5  ;;  %v393_v9 = vld [vmem:[#allocation8 + $0x18] sm:$0xff]   ;;  %v324_v11 = vld [vmem:[%s585_s2] ss:$0 sm:$0xff]  ;;  %v395_v19 = vld [vmem:[#allocation8 + $0x8] sm:$0xff]   ;;  %s313_s25 = sshll.u32 %s513_s24, 4  ;;  %s314_s25 = int_to_ptr.vmem [resolvable:$true] %s313_s25 }
  0x37   :  { %368 = vmatprep.subr.bf16.mxu0 %v511_v0  ;;  %358 = vmatprep.subr.bf16.mxu1 %v511_v0  ;;  %v396_v20 = vld [vmem:[#allocation8] sm:$0xff]   ;;  %v326_v21 = vld [vmem:[%s587_s4] ss:$0 sm:$0xff]  ;;  %s477_s4 = scalar_lea.vmem %s314_s25, 128  ;;  %p482_p7 = scmp.lt.s32.totalorder %s314_s25, %s314_s25 }
  0x38   :  { %v332_v29 = vld [vmem:[%s589_s6] ss:$0 sm:$0xff]  ;;  %p478_p6 = scmp.ne.s32.totalorder %s314_s25, %s477_s4  ;;  %p483_p8 = scmp.lt.s32.totalorder %s477_s4, %s477_s4 }
  0x39   :  { %353 = vmatmul.mubr.msk.bf16.vlgmr.msra.gmra.mxu0 %vm89_vm2, %v80_v4 }
  0x3a   :  { %376 = vmatprep.mubr.msk.bf16.mxu0 %vm512_vm0, %v511_v0  ;;  %359 = vmatpush3.bf16.msra.mxu1 %v390_v6  ;;  %p484_p9 = por %p483_p8, %p482_p7 }
  0x3b   :  { %360 = vmatprep.subr.bf16.mxu1 %v511_v0  ;;  %369 = vmatpush3.bf16.msra.mxu0 %v393_v9 }
  0x3c   :  { %370 = vmatprep.subr.bf16.mxu0 %v511_v0  ;;  %p485_p10 = pnand %p484_p9, %p478_p6 }
  0x3e   :  { %361 = vmatpush3.bf16.msra.mxu1 %v391_v7 }
  0x3f   :  { %362 = vmatprep.subr.bf16.mxu1 %v511_v0  ;;  %371 = vmatpush3.bf16.msra.mxu0 %v394_v10 }
  0x40   :  { %372 = vmatprep.subr.bf16.mxu0 %v511_v0 }
  0x42   :  { %363 = vmatpush3.bf16.msra.mxu1 %v392_v8 }
  0x43   :  { %373 = vmatpush3.bf16.msra.mxu0 %v395_v19 }
  0x44   :  { %374 = vmatprep.subr.bf16.mxu0 %v511_v0 }
  0x47   :  { %375 = vmatpush3.bf16.msra.mxu0 %v396_v20 }
  0xf9   :  { %v131_v12 = vpop.f32.mrf.mxu0 }
  0xfa   :  { %v132_v13 = vadd.f32 %v324_v11, %v131_v12 }
  0xfb   :  { %v354_v14 = vpop.f32.mrf.mxu0 }
  0xfc   :  { %v137_v15 = vmax.f32 %v132_v13, 0.0 }
  0xfd   :  { %v134_v16 = vpop.f32.mrf.mxu0 }
  0xfe   :  { %v138_v17 = vpack.c.bf16 %v137_v15, %v137_v15 }
  0xff   :  { %v355_v18 = vpop.f32.mrf.mxu0 }
 0x100   :  { %365 = vmatmul.mubr.msk.bf16.vlgmr.msra.gmra.mxu1 %vm178_vm3, %v138_v17 }
 0x1c0   :  { %v216_v22 = vpop.f32.mrf.mxu1 }
 0x1c1   :  { %v217_v23 = vadd.f32 %v326_v21, %v216_v22 }
 0x1c2   :  { %v366_v24 = vpop.f32.mrf.mxu1 }
 0x1c3   :  { %v222_v25 = vmax.f32 %v217_v23, 0.0 }
 0x1c4   :  { %v219_v26 = vpop.f32.mrf.mxu1 }
 0x1c5   :  { %v223_v27 = vpack.c.bf16 %v222_v25, %v222_v25 }
 0x1c6   :  { %v367_v28 = vpop.f32.mrf.mxu1 }
 0x1c7   :  { %377 = vmatmul.mubr.msk.bf16.vlgmr.msra.gmra.mxu0 %vm178_vm3, %v223_v27 }
 0x287   :  { %v300_v30 = vpop.f32.mrf.mxu0 }
 0x288   :  { %v301_v31 = vadd.f32 %v332_v29, %v300_v30 }
 0x289   :  { %v378_v32 = vpop.f32.mrf.mxu0 }
 0x28a   :  { %306 = vst [vmem:[#allocation10] sm:$0xff] %v301_v31 }
 0x28b   :  { %v303_v33 = vpop.f32.mrf.mxu0 }
 0x28c   :  { %488 = shalt.err (!%p485_p10)
}
 0x28d   :  { %316 = dma.vmem_to_hbm [thread:$0]  %s314_s25, 128, %s590_s7, [#allocation4]   ;;  %v379_v34 = vpop.f32.mrf.mxu0 }
 0x28e   :  { %503 = dma.done.wait [#allocation4], 128  }
 0x28f   :  { %504 = vsyncadd [#allocation4], 4294967168 }
 0x290   :  { %320 = vsyncpa [#allocation3], 1 }
 0x291   :  { %321 = vsyncpa [#allocation6], 1 }
 0x292   :  { %322 = vsyncpa [#allocation9], 1 }
 0x293   :  { %323 = vsyncpa [#allocation4], 1 }

</bundles_post_ra>
